<compile_context>
chip_gen: v7x
topology: tpu7x:2x2x1
jax: 0.10.0
libtpu: 0.0.40
codegen_flags: <defaults>
</compile_context>

<pallas_src>
import functools

import jax
import jax.numpy as jnp
from jax import lax
from jax.experimental import pallas as pl
from jax.experimental.pallas import tpu as pltpu


def _softmax_xent_kernel(x_ref, t_ref, o_ref, acc_ref, *,
                         total_batch, tb, npc, has_padding):
    c = pl.program_id(0)      # core-split axis ("parallel")
    j = pl.program_id(1)      # batch-tile reduction axis ("arbitrary")

    # init per-sweep accumulator
    @pl.when(j == 0)
    def _():
        acc_ref[...] = jnp.zeros_like(acc_ref)

    x_raw = x_ref[...]                            # (tb, C) native dtype
    x = x_raw.astype(jnp.float32)                 # f32 for the LSE path
    tgt = t_ref[...]                              # (tb, 1) int32

    # log-sum-exp over the class (lane) axis: one exp/elem, one log/row.
    m = jnp.max(x, axis=1, keepdims=True)
    e = jnp.exp(x - m)
    s = jnp.sum(e, axis=1, keepdims=True)
    lse = m + jnp.log(s)                          # (tb, 1)

    # gather x[row, target[row]] via one-hot select.
    # (1, C) iota broadcast against (tb, 1) targets; select on native dtype
    # (only one nonzero per row, so the reduce is exact even in bf16).
    class_ids = lax.broadcasted_iota(jnp.int32, (1, x_raw.shape[1]), 1)
    onehot = class_ids == tgt                     # (tb, C) via broadcast
    picked = jnp.sum(jnp.where(onehot, x_raw, jnp.zeros((), x_raw.dtype)),
                     axis=1, keepdims=True).astype(jnp.float32)

    loss_rows = lse - picked                      # (tb, 1)

    if has_padding:
        start = (c * npc + j) * tb
        tile_may_pad = start + tb > total_batch

        @pl.when(tile_may_pad)
        def _():
            row_ids = start + lax.broadcasted_iota(jnp.int32, (tb, 1), 0)
            acc_ref[...] += jnp.where(row_ids < total_batch, loss_rows, 0.0)

        @pl.when(jnp.logical_not(tile_may_pad))
        def _():
            acc_ref[...] += loss_rows
    else:
        acc_ref[...] += loss_rows

    # finalize this core's sweep: single reduction, lane-dense (1, 128) store
    @pl.when(j == npc - 1)
    def _():
        o_ref[...] = jnp.broadcast_to(jnp.sum(acc_ref[...]), o_ref.shape)


def _default_num_cores():
    # 2 TensorCores per chip only on v7x; v5e/v6e are single-TC.
    try:
        kind = jax.devices()[0].device_kind.lower()
    except Exception:
        return 1
    return 2 if "v7" in kind else 1


def softmax_cross_entropy_pallas(logits, target, *, num_cores=None,
                                 max_block_bytes=8 * 1024 * 1024,
                                 vmem_budget_bytes=24 * 1024 * 1024):
    """logits: (B, C) (or (N, C, d1, ...)); target: int class indices.
    Returns scalar f32 mean NLL of log_softmax(logits, axis=1)."""
    # PyTorch NLLLoss supports (N, C, d1, ...) with target (N, d1, ...): flatten.
    if logits.ndim > 2:
        C = logits.shape[1]
        logits = jnp.moveaxis(logits, 1, -1).reshape(-1, C)
        target = target.reshape(-1)

    B, C = logits.shape
    itemsize = jnp.dtype(logits.dtype).itemsize

    if num_cores is None:
        num_cores = _default_num_cores()
    # Don't split tiny batches across cores (extra padding, smaller tiles).
    num_cores = max(1, min(num_cores, max(1, B // 8)))

    # --- batch-tile sizing -------------------------------------------------
    # VMEM cost per batch row (lane dim pads to multiples of 128 in VMEM):
    lanes = -(-C // 128) * 128
    per_row_bytes = (2 * lanes * itemsize   # x block, double buffered
                     + 2 * 128 * 4          # (tb,1) int32 target block, double buffered
                     + 128 * 4)             # (tb,1) f32 accumulator scratch
    tb_vmem = vmem_budget_bytes // per_row_bytes
    tb_hbm = max_block_bytes // max(1, C * itemsize)   # target ~8 MiB HBM reads / step
    per_core = -(-B // num_cores)           # ceil
    per_core = -(-per_core // 8) * 8        # round up to sublane multiple
    tb = min(tb_vmem, tb_hbm, per_core)
    tb = max(8, (tb // 8) * 8)

    pad_B = -(-B // (tb * num_cores)) * (tb * num_cores)
    npc = pad_B // (tb * num_cores)

    x = logits
    t = target.astype(jnp.int32)
    if pad_B != B:
        x = jnp.pad(x, ((0, pad_B - B), (0, 0)))
        t = jnp.pad(t, ((0, pad_B - B),))
    t = t.reshape(pad_B, 1)

    # Raise scoped VMEM: covers v5e's 16 MiB default; stays within every chip's
    # physical VMEM. Grows (capped) only for huge-C shapes forced to tb == 8.
    est_vmem = per_row_bytes * tb + (2 << 20)
    vmem_limit = int(min(max(32 << 20, est_vmem), 48 << 20))

    kernel = functools.partial(_softmax_xent_kernel, total_batch=B, tb=tb,
                               npc=npc, has_padding=(pad_B != B))

    out = pl.pallas_call(
        kernel,
        out_shape=jax.ShapeDtypeStruct((1, num_cores * 128), jnp.float32),
        grid_spec=pltpu.PrefetchScalarGridSpec(
            num_scalar_prefetch=0,
            grid=(num_cores, npc),
            in_specs=[
                pl.BlockSpec((tb, C), lambda c, j: (c * npc + j, 0)),
                # (tb, 1) target block: a single contiguous 4*tb-byte DMA per
                # step; negligible next to the multi-MiB x block.
                pl.BlockSpec((tb, 1), lambda c, j: (c * npc + j, 0)),
            ],
            out_specs=pl.BlockSpec((1, 128), lambda c, j: (0, c)),
            scratch_shapes=[pltpu.VMEM((tb, 1), jnp.float32)],
        ),
        compiler_params=pltpu.CompilerParams(
            dimension_semantics=("parallel", "arbitrary"),
            vmem_limit_bytes=vmem_limit,
        ),
    )(x, t)

    partials = out.reshape(num_cores, 128)[:, 0]
    return jnp.sum(partials) / jnp.float32(B)


def softmax_cross_entropy_ref(logits, target):
    """Pure-JAX reference mirroring the PyTorch module (NLLLoss(LogSoftmax), mean)."""
    if logits.ndim > 2:
        C = logits.shape[1]
        logits = jnp.moveaxis(logits, 1, -1).reshape(-1, C)
        target = target.reshape(-1)
    logp = jax.nn.log_softmax(logits.astype(jnp.float32), axis=1)
    nll = -jnp.take_along_axis(logp, target[:, None].astype(jnp.int32), axis=1)[:, 0]
    return jnp.mean(nll)


if __name__ == "__main__":
    key = jax.random.PRNGKey(0)

    # Case 1: small, exact tiling (matches the module's typical (B, C) usage).
    B, C = 8, 32
    k1, k2, k3, k4 = jax.random.split(key, 4)
    logits = jax.random.normal(k1, (B, C), dtype=jnp.float32)
    target = jax.random.randint(k2, (B,), 0, C, dtype=jnp.int32)
    out = jax.block_until_ready(softmax_cross_entropy_pallas(logits, target))
    ref = softmax_cross_entropy_ref(logits, target)
    assert jnp.allclose(out, ref, rtol=1e-4, atol=1e-5), (out, ref)

    # Case 2: ragged batch + forced 2-core split (exercises padding mask path).
    B2, C2 = 37, 96
    logits2 = jax.random.normal(k3, (B2, C2), dtype=jnp.float32)
    target2 = jax.random.randint(k4, (B2,), 0, C2, dtype=jnp.int32)
    out2 = jax.block_until_ready(
        softmax_cross_entropy_pallas(logits2, target2, num_cores=2))
    ref2 = softmax_cross_entropy_ref(logits2, target2)
    assert jnp.allclose(out2, ref2, rtol=1e-4, atol=1e-5), (out2, ref2)

    print("KERNEL_OK")
</pallas_src>

<mosaic_0001>
module attributes {stable_mosaic.version = 11 : i64} {
  func.func @_softmax_xent_kernel(%arg0: i32, %arg1: i32, %arg2: memref<8x32xf32, #tpu.memory_space<vmem>>, %arg3: memref<8x1xi32, #tpu.memory_space<vmem>>, %arg4: memref<1x128xf32, #tpu.memory_space<vmem>>, %arg5: memref<8x1xf32, #tpu.memory_space<vmem>>) attributes {dimension_semantics = [#tpu.dimension_semantics<parallel>, #tpu.dimension_semantics<arbitrary>], iteration_bounds = array<i64: 1, 1>, scalar_prefetch = 0 : i64, scratch_operands = 1 : i64, tpu.core_type = #tpu.core_type<tc>, window_params = [{transform_indices = @transform_0, window_bounds = array<i64: 8, 32>}, {transform_indices = @transform_1, window_bounds = array<i64: 8, 1>}, {transform_indices = @transform_2, window_bounds = array<i64: 1, 128>}]} {
    %c0_i32 = arith.constant 0 : i32
    %0 = arith.cmpi eq, %arg1, %c0_i32 : i32
    %1 = arith.extui %0 : i1 to i32
    %c0_i32_0 = arith.constant 0 : i32
    %2 = arith.cmpi ne, %1, %c0_i32_0 : i32
    scf.if %2 {
      %cst_13 = arith.constant 0.000000e+00 : f32
      %29 = vector.broadcast %cst_13 : f32 to vector<8x1xf32>
      %c0_14 = arith.constant 0 : index
      %c0_15 = arith.constant 0 : index
      %30 = vector.load %arg5[%c0_14, %c0_15] : memref<8x1xf32, #tpu.memory_space<vmem>>, vector<8x1xf32>
      tpu.vector_store %arg5[%c0_14, %c0_15], %29 {strides = array<i32>} : memref<8x1xf32, #tpu.memory_space<vmem>>, vector<8x1xf32>,
    } else {
    }
    %c0 = arith.constant 0 : index
    %c0_1 = arith.constant 0 : index
    %3 = vector.load %arg2[%c0, %c0_1] : memref<8x32xf32, #tpu.memory_space<vmem>>, vector<8x32xf32>
    %c0_2 = arith.constant 0 : index
    %c0_3 = arith.constant 0 : index
    %4 = vector.load %arg3[%c0_2, %c0_3] : memref<8x1xi32, #tpu.memory_space<vmem>>, vector<8x1xi32>
    %cst = arith.constant dense<0xFF800000> : vector<8xf32>
    %5 = vector.multi_reduction <maximumf>, %3, %cst [1] : vector<8x32xf32> to vector<8xf32>
    %6 = vector.shape_cast %5 : vector<8xf32> to vector<8x1xf32>
    %7 = vector.broadcast %6 : vector<8x1xf32> to vector<8x32xf32>
    %8 = arith.subf %3, %7 : vector<8x32xf32>
    %9 = math.exp %8 : vector<8x32xf32>
    %cst_4 = arith.constant dense<0.000000e+00> : vector<8xf32>
    %10 = vector.multi_reduction <add>, %9, %cst_4 [1] : vector<8x32xf32> to vector<8xf32>
    %11 = vector.shape_cast %10 : vector<8xf32> to vector<8x1xf32>
    %12 = math.log %11 : vector<8x1xf32>
    %13 = arith.addf %6, %12 : vector<8x1xf32>
    %14 = tpu.iota {dimensions = array<i32: 1>} : vector<1x32xi32>
    %15 = vector.broadcast %14 : vector<1x32xi32> to vector<8x32xi32>
    %16 = vector.broadcast %4 : vector<8x1xi32> to vector<8x32xi32>
    %17 = arith.cmpi eq, %15, %16 : vector<8x32xi32>
    %cst_5 = arith.constant 0.000000e+00 : f32
    %18 = vector.broadcast %cst_5 : f32 to vector<8x32xf32>
    %19 = arith.select %17, %3, %18 : vector<8x32xi1>, vector<8x32xf32>
    %cst_6 = arith.constant dense<0.000000e+00> : vector<8xf32>
    %20 = vector.multi_reduction <add>, %19, %cst_6 [1] : vector<8x32xf32> to vector<8xf32>
    %21 = vector.shape_cast %20 : vector<8xf32> to vector<8x1xf32>
    %22 = arith.subf %13, %21 : vector<8x1xf32>
    %c0_7 = arith.constant 0 : index
    %c0_8 = arith.constant 0 : index
    %23 = vector.load %arg5[%c0_7, %c0_8] : memref<8x1xf32, #tpu.memory_space<vmem>>, vector<8x1xf32>
    %24 = arith.addf %23, %22 : vector<8x1xf32>
    %c0_9 = arith.constant 0 : index
    %c0_10 = arith.constant 0 : index
    %25 = vector.load %arg5[%c0_9, %c0_10] : memref<8x1xf32, #tpu.memory_space<vmem>>, vector<8x1xf32>
    tpu.vector_store %arg5[%c0_9, %c0_10], %24 {strides = array<i32>} : memref<8x1xf32, #tpu.memory_space<vmem>>, vector<8x1xf32>,
    %c0_i32_11 = arith.constant 0 : i32
    %26 = arith.cmpi eq, %arg1, %c0_i32_11 : i32
    %27 = arith.extui %26 : i1 to i32
    %c0_i32_12 = arith.constant 0 : i32
    %28 = arith.cmpi ne, %27, %c0_i32_12 : i32
    scf.if %28 {
      %c0_13 = arith.constant 0 : index
      %c0_14 = arith.constant 0 : index
      %29 = vector.load %arg5[%c0_13, %c0_14] : memref<8x1xf32, #tpu.memory_space<vmem>>, vector<8x1xf32>
      %30 = vector.shape_cast %29 : vector<8x1xf32> to vector<1x8x1xf32>
      %cst_15 = arith.constant dense<0.000000e+00> : vector<1xf32>
      %31 = vector.multi_reduction <add>, %30, %cst_15 [1, 2] : vector<1x8x1xf32> to vector<1xf32>
      %32 = vector.shape_cast %31 : vector<1xf32> to vector<1x1x1xf32>
      %33 = vector.extract %32[0, 0, 0] : f32 from vector<1x1x1xf32>
      %34 = vector.broadcast %33 : f32 to vector<1x128xf32>
      %c0_16 = arith.constant 0 : index
      %c0_17 = arith.constant 0 : index
      %35 = vector.load %arg4[%c0_16, %c0_17] : memref<1x128xf32, #tpu.memory_space<vmem>>, vector<1x128xf32>
      tpu.vector_store %arg4[%c0_16, %c0_17], %34 {strides = array<i32>} : memref<1x128xf32, #tpu.memory_space<vmem>>, vector<1x128xf32>,
    } else {
    }
    return
  }
  func.func @transform_0(%arg0: i32, %arg1: i32) -> (i32, i32) {
    %c1_i32 = arith.constant 1 : i32
    %0 = arith.muli %arg0, %c1_i32 : i32
    %1 = arith.addi %0, %arg1 : i32
    %c0_i32 = arith.constant 0 : i32
    %c0_i32_0 = arith.constant 0 : i32
    return %1, %c0_i32 : i32, i32
  }
  func.func @transform_1(%arg0: i32, %arg1: i32) -> (i32, i32) {
    %c1_i32 = arith.constant 1 : i32
    %0 = arith.muli %arg0, %c1_i32 : i32
    %1 = arith.addi %0, %arg1 : i32
    %c0_i32 = arith.constant 0 : i32
    %c0_i32_0 = arith.constant 0 : i32
    return %1, %c0_i32 : i32, i32
  }
  func.func @transform_2(%arg0: i32, %arg1: i32) -> (i32, i32) {
    %c0_i32 = arith.constant 0 : i32
    %c0_i32_0 = arith.constant 0 : i32
    return %c0_i32, %arg0 : i32, i32
  }
}

</mosaic_0001>

<bundles_post_ra>
// kernel: tpu_custom_call.1
= control target key start
LH: loop header
LB: loop body
LE: loop exit
PB: predicated region body
PF: predicated region fallthrough
CT: control target
= control target key end

     0   :  { %vm54_vm0 = vcmask 261120   ;;  %s197_s0 = inlined_call_operand.vmem [shape: f32[8,32], index: 0, kind: input, shape index: {}]   ;;  %s198_s1 = inlined_call_operand.vmem [shape: s32[8,1], index: 1, kind: input, shape index: {}]   ;;  %s199_s2 = inlined_call_operand.hbm [shape: f32[1,128], index: 2, kind: output, shape index: {}]  }
   0x1   :  { %v52_v0 = vld [vmem:[%s197_s0] sm:$0xff] }
   0x2   :  { %7 = vsyncpa [#allocation4], 0  ;;  %v55_v1 = vsel %vm54_vm0, %v52_v0, -inf  ;;  %v158_v2 = vmov 0   ;;  %v53_v3 = vld [vmem:[%s198_s1] sm:$0xff]  ;;  %v67_v7 = vlaneseq  ;;  %vm50_vm2 = vcmask 7168  }
   0x3   :  { %129 = vset.pattern.permute.xlu0 %v158_v2  ;;  %v159_v14 = vmov 0.0   ;;  %s160_s0 = smov [#allocation3]  }
   0x4   :  { %56 = vmax.xlane.f32.xlu0 %v55_v1  ;;  %v68_v8 = vand.u32 127, %v67_v7  ;;  %51 = vst.msk [vmem:[#allocation2] sm:$0xff] %vm50_vm2, %v159_v14  ;;  %s104_s1 = sshll.u32 %s160_s0, 4  ;;  %s105_s1 = int_to_ptr.vmem [resolvable:$true] %s104_s1 }
   0x5   :  { %s134_s14 = scalar_lea.vmem %s105_s1, 16  ;;  %s138_s15 = scalar_lea.vmem %s105_s1, 32 }
   0x6   :  { %p135_p0 = scmp.ne.s32.totalorder %s105_s1, %s134_s14  ;;  %p139_p1 = scmp.lt.s32.totalorder %s105_s1, %s105_s1 }
   0x7   :  { %p140_p2 = scmp.lt.s32.totalorder %s138_s15, %s134_s14 }
   0x9   :  { %p141_p3 = por %p140_p2, %p139_p1 }
   0xb   :  { %v78_v20 = vld [vmem:[#allocation2] sm:$0xff]  ;;  %p142_p4 = pnand %p141_p3, %p135_p0 }
  0x1a   :  { %70 = vperm.xlu0 %129, %v53_v3  }
  0x91   :  { %v57_v4 = vpop.xlane.xlu0 %56 }
  0x92   :  { %v58_v5 = vsub.f32 %v52_v0, %v57_v4 }
  0x94   :  { %v59_v6 = vmul.f32 1.442695, %v58_v5 }
  0x96   :  { %130 = vpow2.f32 %v59_v6 }
  0x99   :  { %v71_v9 = vpop.permute.xlu0 %70 }
  0x9a   :  { %vm72_vm1 = vcmp.eq.s32.totalorder %v68_v8, %v71_v9 }
  0x9b   :  { %v73_v11 = vsel %vm72_vm1, %v52_v0, 0.0 }
  0x9c   :  { %v74_v13 = vsel %vm54_vm0, %v73_v11, 0.0 }
  0xa0   :  { %v131_v10 = vpop.eup %130 }
  0xa1   :  { %v61_v12 = vsel %vm54_vm0, %v131_v10, 0.0 }
  0xa2   :  { %62 = vadd.xlane.f32.xlu1 %v61_v12 }
  0xa6   :  { %75 = vadd.xlane.f32.xlu1 %v74_v13 }
 0x12f   :  { %v63_v15 = vpop.xlane.xlu1 %62 }
 0x130   :  { %132 = vlog2.f32 %v63_v15 }
 0x133   :  { %v76_v18 = vpop.xlane.xlu1 %75 }
 0x13a   :  { %v133_v16 = vpop.eup %132 }
 0x13b   :  { %v65_v17 = vmul.f32 0.6931472, %v133_v16 }
 0x13d   :  { %v66_v19 = vadd.f32 %v65_v17, %v57_v4 }
 0x13f   :  { %v77_v21 = vsub.f32 %v66_v19, %v76_v18 }
 0x141   :  { %v79_v22 = vadd.f32 %v78_v20, %v77_v21 }
 0x143   :  { %81 = vst.msk [vmem:[#allocation2] sm:$0xff] %vm50_vm2, %v79_v22 }
 0x14a   :  { %v85_v23 = vld [vmem:[#allocation2] sm:$0xff] }
 0x14b   :  { %v86_v24 = vsel %vm50_vm2, %v85_v23, 0.0 }
 0x14c   :  { %87 = vadd.xlane.f32.xlu1 %v86_v24 }
 0x1d9   :  { %v88_v25 = vpop.xlane.xlu1 %87 }
 0x1da   :  { %v89_v26 = vrot.slane %v88_v25, 4 }
 0x1dc   :  { %v90_v27 = vadd.f32 %v89_v26, %v88_v25 }
 0x1de   :  { %v91_v28 = vrot.slane %v90_v27, 2 }
 0x1e0   :  { %v92_v29 = vadd.f32 %v91_v28, %v90_v27 }
 0x1e2   :  { %v93_v30 = vrot.slane %v92_v29, 1 }
 0x1e4   :  { %v94_v31 = vadd.f32 %v93_v30, %v92_v29 }
 0x1e6   :  { %124 = vpush %v94_v31 }
 0x217   :  { %s125_s13 = spop %124 }
 0x218   :  { %v96_v32 = vstv %s125_s13 }
 0x219   :  { %97 = vst [vmem:[#allocation3] sm:$0x1] %v96_v32 }
 0x21a   :  { %145 = shalt.err (!%p142_p4)
}
 0x21b   :  { %s146_s18 = scalar_lea.hbm %s199_s2, 16 }
 0x21c   :  { %p147_p5 = scmp.ne.s32.totalorder %s199_s2, %s146_s18  ;;  %p150_p6 = scmp.lt.u32.totalorder %s146_s18, %s199_s2 }
 0x21e   :  { %p152_p7 = pnand %p150_p6, %p147_p5 }
 0x220   :  { %155 = shalt.err (!%p152_p7)
}
 0x221   :  { %107 = dma.vmem_to_hbm [thread:$0]  %s105_s1, 16, %s199_s2, [#allocation4]  }
 0x222   :  { %156 = dma.done.wait [#allocation4], 16  }
 0x223   :  { %157 = vsyncadd [#allocation4], 4294967280 }
 0x224   :  { %111 = vsyncpa [#allocation4], 1 }

</bundles_post_ra>
